<compile_context>
chip_gen: v5e
topology: v5e:2x2
jax: 0.10.0
libtpu: 0.0.40
codegen_flags: <defaults>
</compile_context>

<pallas_src>
import jax
import jax.numpy as jnp
from jax import lax
from jax.experimental import pallas as pl
from jax.experimental.pallas import tpu as pltpu

HIDDEN = 64
BN_EPS = 1e-5


def _round_up(n, m):
    return ((n + m - 1) // m) * m


def _make_kernel(batch, tile_b, num_class):
    inv_n = 1.0 / batch

    def kernel(x_ref, w1t_ref, gamma_ref, beta_ref, w2t_ref, b2_ref, o_ref,
               sum_ref, ssq_ref, scale_ref, shift_ref):
        phase = pl.program_id(0)   # 0: matmul1 + batch stats, 1: normalize + matmul2
        i = pl.program_id(1)       # batch-tile index

        # layer_1 without bias: training-mode BN subtracts the batch mean, which
        # cancels b1 exactly.  (If b1 is ever re-added or BN switched to eval
        # mode, this cancellation argument no longer holds.)
        def matmul1():
            return jnp.dot(x_ref[...], w1t_ref[...],
                           preferred_element_type=jnp.float32)     # [TB, HP] f32

        @pl.when(phase == 0)
        def _():
            @pl.when(i == 0)
            def _():
                sum_ref[...] = jnp.zeros_like(sum_ref)
                ssq_ref[...] = jnp.zeros_like(ssq_ref)

            z1 = matmul1()
            # Ragged last tile: rows >= batch hold unspecified data (OOB block
            # read); mask them out of the batch statistics (couple of VPU ops).
            valid = batch - i * tile_b
            row_ids = lax.broadcasted_iota(jnp.int32, (tile_b, 1), 0)
            z1 = jnp.where(row_ids < valid, z1, 0.0)
            # NOTE: if a bundle dump ever shows the XLU slot saturating here,
            # these axis-0 reductions can move to the (mostly idle) MXU as
            # ones-row matmuls; left as jnp.sum pending that measurement.
            sum_ref[...] += jnp.sum(z1, axis=0, keepdims=True)
            ssq_ref[...] += jnp.sum(z1 * z1, axis=0, keepdims=True)

        @pl.when(phase == 1)
        def _():
            @pl.when(i == 0)
            def _():
                mean = sum_ref[...] * inv_n
                var = ssq_ref[...] * inv_n - mean * mean     # biased (BN train mode)
                var = jnp.maximum(var, 0.0)                  # guard E[z^2]-m^2 < 0
                scale = gamma_ref[...] * lax.rsqrt(var + BN_EPS)
                scale_ref[...] = scale
                shift_ref[...] = beta_ref[...] - mean * scale

            # Recompute z1 instead of keeping a batch-sized VMEM slab resident
            # (K = F is tiny; re-reading x costs only F*4 bytes/row).
            z1 = matmul1()
            h = jnp.maximum(z1 * scale_ref[...] + shift_ref[...], 0.0)
            z2 = jnp.dot(h.astype(w2t_ref.dtype), w2t_ref[...],
                         preferred_element_type=jnp.float32)
            z2 = z2 + b2_ref[...]
            # Store only the real num_class lanes (masked vst) rather than a
            # 128-lane padded slab: 32x less output HBM traffic for C=4 and no
            # wrapper-side slice pass.
            o_ref[...] = 3.0 * jax.nn.sigmoid(z2[:, :num_class])

    return kernel


def linear_regression_head_one_hidden(x, w1, b1, gamma, beta, w2, b2, *,
                                      tile_b=1024, use_bf16=False):
    """Pallas forward of LinearRegressionHeadOneHidden (training-mode BatchNorm).

    use_bf16: cast the matmul operands (x/w1t and h/w2t) to bf16 with f32
    accumulation -- faster on the bf16-native MXU (v5e/v6e/v7x) and halves the
    x HBM read, at ~1e-3-level deviation from the f32 PyTorch reference.
    """
    del b1  # cancelled exactly by the batch-mean subtraction in BatchNorm1d
    B, F = x.shape
    H = w1.shape[0]
    C = w2.shape[0]
    HP = _round_up(H, 128)             # lane-dense hidden dim (64 -> 128)
    CP = _round_up(C, 128)             # MXU-friendly padded N for matmul2

    TB = min(_round_up(B, 8), _round_up(tile_b, 8))
    NB = pl.cdiv(B, TB)                # ragged last tile handled in-kernel (no x pad)

    f32 = jnp.float32
    mm_dtype = jnp.bfloat16 if use_bf16 else f32

    xk = x.astype(mm_dtype)
    # Pre-transposed, zero-padded weights (once at trace time, outside the kernel).
    w1t = jnp.pad(w1.astype(f32).T, ((0, 0), (0, HP - H))).astype(mm_dtype)        # [F, HP]
    w2t = jnp.pad(w2.astype(f32).T, ((0, HP - H), (0, CP - C))).astype(mm_dtype)   # [HP, CP]
    gammap = jnp.pad(gamma.astype(f32), (0, HP - H)).reshape(1, HP)
    betap = jnp.pad(beta.astype(f32), (0, HP - H)).reshape(1, HP)
    b2p = jnp.pad(b2.astype(f32), (0, CP - C)).reshape(1, CP)

    out = pl.pallas_call(
        _make_kernel(B, TB, C),
        out_shape=jax.ShapeDtypeStruct((B, C), f32),
        grid_spec=pltpu.PrefetchScalarGridSpec(
            num_scalar_prefetch=0,
            grid=(2, NB),
            in_specs=[
                pl.BlockSpec((TB, F), lambda p, i: (i, 0)),    # x, read in both phases
                pl.BlockSpec((F, HP), lambda p, i: (0, 0)),    # w1^T (resident)
                pl.BlockSpec((1, HP), lambda p, i: (0, 0)),    # gamma
                pl.BlockSpec((1, HP), lambda p, i: (0, 0)),    # beta
                pl.BlockSpec((HP, CP), lambda p, i: (0, 0)),   # w2^T (resident)
                pl.BlockSpec((1, CP), lambda p, i: (0, 0)),    # b2
            ],
            # Output only written in phase 1; keep its block index pinned at 0
            # during phase 0 so no unwritten tile gets flushed to HBM.
            out_specs=pl.BlockSpec((TB, C), lambda p, i: (p * i, 0)),
            scratch_shapes=[
                pltpu.VMEM((1, HP), f32),   # running sum over batch
                pltpu.VMEM((1, HP), f32),   # running sum of squares
                pltpu.VMEM((1, HP), f32),   # folded BN scale
                pltpu.VMEM((1, HP), f32),   # folded BN shift
            ],
        ),
        compiler_params=pltpu.CompilerParams(
            # Both grid axes carry state (phase ordering, stat accumulation).
            # TODO(synk): on v7x a 2-TC batch split needs a cross-core stats
            # combine (CMEM/VMEM_SHARED + core_barrier); kept serial here.
            dimension_semantics=("arbitrary", "arbitrary"),
            vmem_limit_bytes=32 * 1024 * 1024,
        ),
    )(xk, w1t, gammap, betap, w2t, b2p)
    return out


def init_params(key, num_feature, num_class):
    """Deterministic init mirroring PyTorch defaults (uniform(-1/sqrt(fan_in), ...))."""
    k1, k2, k3, k4 = jax.random.split(key, 4)
    bound1 = 1.0 / jnp.sqrt(num_feature)
    w1 = jax.random.uniform(k1, (HIDDEN, num_feature), jnp.float32, -bound1, bound1)
    b1 = jax.random.uniform(k2, (HIDDEN,), jnp.float32, -bound1, bound1)
    bound2 = 1.0 / jnp.sqrt(HIDDEN)
    w2 = jax.random.uniform(k3, (num_class, HIDDEN), jnp.float32, -bound2, bound2)
    b2 = jax.random.uniform(k4, (num_class,), jnp.float32, -bound2, bound2)
    gamma = jnp.ones((HIDDEN,), jnp.float32)   # BatchNorm1d weight init
    beta = jnp.zeros((HIDDEN,), jnp.float32)   # BatchNorm1d bias init
    return w1, b1, gamma, beta, w2, b2


def _reference(x, w1, b1, gamma, beta, w2, b2):
    """Pure-JAX reference matching the PyTorch forward (training-mode BN)."""
    z1 = x @ w1.T + b1
    mean = jnp.mean(z1, axis=0, keepdims=True)
    var = jnp.mean((z1 - mean) ** 2, axis=0, keepdims=True)
    h = jnp.maximum((z1 - mean) / jnp.sqrt(var + BN_EPS) * gamma + beta, 0.0)
    return 3.0 * jax.nn.sigmoid(h @ w2.T + b2)


if __name__ == "__main__":
    batch, num_feature, num_class = 8, 32, 4
    key = jax.random.PRNGKey(0)
    kx, kx2, kp = jax.random.split(key, 3)
    x = jax.random.normal(kx, (batch, num_feature), jnp.float32)
    params = init_params(kp, num_feature, num_class)

    out = linear_regression_head_one_hidden(x, *params)
    jax.block_until_ready(out)
    assert out.shape == (batch, num_class)
    ref = _reference(x, *params)
    assert jnp.allclose(out, ref, atol=2e-5, rtol=2e-5), "mismatch vs reference (single tile)"

    # Ragged multi-tile path: B=20, tile 8 -> 3 tiles, last tile has 4 valid rows.
    x2 = jax.random.normal(kx2, (20, num_feature), jnp.float32)
    out2 = linear_regression_head_one_hidden(x2, *params, tile_b=8)
    jax.block_until_ready(out2)
    assert out2.shape == (20, num_class)
    ref2 = _reference(x2, *params)
    assert jnp.allclose(out2, ref2, atol=2e-5, rtol=2e-5), "mismatch vs reference (ragged tiles)"

    # Optional bf16-MXU path (flagged; looser tolerance vs the f32 reference).
    out3 = linear_regression_head_one_hidden(x2, *params, tile_b=8, use_bf16=True)
    jax.block_until_ready(out3)
    assert out3.shape == (20, num_class)
    assert float(jnp.max(jnp.abs(out3 - ref2))) < 0.05, "bf16 path diverged too far"

    print("KERNEL_OK")
</pallas_src>

<mosaic_0001>
module attributes {stable_mosaic.version = 11 : i64} {
  func.func @kernel(%arg0: i32, %arg1: i32, %arg2: memref<8x32xf32, #tpu.memory_space<vmem>>, %arg3: memref<32x128xf32, #tpu.memory_space<vmem>>, %arg4: memref<1x128xf32, #tpu.memory_space<vmem>>, %arg5: memref<1x128xf32, #tpu.memory_space<vmem>>, %arg6: memref<128x128xf32, #tpu.memory_space<vmem>>, %arg7: memref<1x128xf32, #tpu.memory_space<vmem>>, %arg8: memref<8x4xf32, #tpu.memory_space<vmem>>, %arg9: memref<1x128xf32, #tpu.memory_space<vmem>>, %arg10: memref<1x128xf32, #tpu.memory_space<vmem>>, %arg11: memref<1x128xf32, #tpu.memory_space<vmem>>, %arg12: memref<1x128xf32, #tpu.memory_space<vmem>>) attributes {dimension_semantics = [#tpu.dimension_semantics<arbitrary>, #tpu.dimension_semantics<arbitrary>], iteration_bounds = array<i64: 2, 1>, scalar_prefetch = 0 : i64, scratch_operands = 4 : i64, tpu.core_type = #tpu.core_type<tc>, window_params = [{transform_indices = @transform_0, window_bounds = array<i64: 8, 32>}, {pipeline_mode = #tpu.pipeline_mode<synchronous>, transform_indices = @transform_1, window_bounds = array<i64: 32, 128>}, {pipeline_mode = #tpu.pipeline_mode<synchronous>, transform_indices = @transform_2, window_bounds = array<i64: 1, 128>}, {pipeline_mode = #tpu.pipeline_mode<synchronous>, transform_indices = @transform_3, window_bounds = array<i64: 1, 128>}, {pipeline_mode = #tpu.pipeline_mode<synchronous>, transform_indices = @transform_4, window_bounds = array<i64: 128, 128>}, {pipeline_mode = #tpu.pipeline_mode<synchronous>, transform_indices = @transform_5, window_bounds = array<i64: 1, 128>}, {transform_indices = @transform_6, window_bounds = array<i64: 8, 4>}]} {
    %c0_i32 = arith.constant 0 : i32
    %0 = arith.cmpi eq, %arg0, %c0_i32 : i32
    %1 = arith.extui %0 : i1 to i32
    %c0_i32_0 = arith.constant 0 : i32
    %2 = arith.cmpi ne, %1, %c0_i32_0 : i32
    scf.if %2 {
      %c0_i32_2 = arith.constant 0 : i32
      %6 = arith.cmpi eq, %arg1, %c0_i32_2 : i32
      %7 = arith.extui %6 : i1 to i32
      %c0_i32_3 = arith.constant 0 : i32
      %8 = arith.cmpi ne, %7, %c0_i32_3 : i32
      scf.if %8 {
        %cst_19 = arith.constant 0.000000e+00 : f32
        %32 = vector.broadcast %cst_19 : f32 to vector<1x128xf32>
        %c0_20 = arith.constant 0 : index
        %c0_21 = arith.constant 0 : index
        %33 = vector.load %arg9[%c0_20, %c0_21] : memref<1x128xf32, #tpu.memory_space<vmem>>, vector<1x128xf32>
        tpu.vector_store %arg9[%c0_20, %c0_21], %32 {strides = array<i32>} : memref<1x128xf32, #tpu.memory_space<vmem>>, vector<1x128xf32>,
        %cst_22 = arith.constant 0.000000e+00 : f32
        %34 = vector.broadcast %cst_22 : f32 to vector<1x128xf32>
        %c0_23 = arith.constant 0 : index
        %c0_24 = arith.constant 0 : index
        %35 = vector.load %arg10[%c0_23, %c0_24] : memref<1x128xf32, #tpu.memory_space<vmem>>, vector<1x128xf32>
        tpu.vector_store %arg10[%c0_23, %c0_24], %34 {strides = array<i32>} : memref<1x128xf32, #tpu.memory_space<vmem>>, vector<1x128xf32>,
      } else {
      }
      %c0 = arith.constant 0 : index
      %c0_4 = arith.constant 0 : index
      %9 = vector.load %arg2[%c0, %c0_4] : memref<8x32xf32, #tpu.memory_space<vmem>>, vector<8x32xf32>
      %c0_5 = arith.constant 0 : index
      %c0_6 = arith.constant 0 : index
      %10 = vector.load %arg3[%c0_5, %c0_6] : memref<32x128xf32, #tpu.memory_space<vmem>>, vector<32x128xf32>
      %cst = arith.constant dense<0.000000e+00> : vector<8x128xf32>
      %11 = tpu.matmul %9, %10, %cst {dimension_numbers = #tpu.dot_dimension_numbers<[1], [0], [0], [1], [0, 0, 1, 1], [], []>} : vector<8x32xf32>, vector<32x128xf32>, vector<8x128xf32> -> vector<8x128xf32>
      %c8_i32 = arith.constant 8 : i32
      %12 = arith.muli %arg1, %c8_i32 : i32
      %c8_i32_7 = arith.constant 8 : i32
      %13 = arith.subi %c8_i32_7, %12 : i32
      %14 = tpu.iota {dimensions = array<i32: 0>} : vector<8x1xi32>
      %15 = vector.broadcast %13 : i32 to vector<8x1xi32>
      %16 = arith.cmpi slt, %14, %15 : vector<8x1xi32>
      %cst_8 = arith.constant 0.000000e+00 : f32
      %17 = vector.shape_cast %16 : vector<8x1xi1> to vector<8x1xi1>
      %18 = vector.broadcast %17 : vector<8x1xi1> to vector<8x128xi1>
      %19 = vector.broadcast %cst_8 : f32 to vector<8x128xf32>
      %20 = arith.select %18, %11, %19 : vector<8x128xi1>, vector<8x128xf32>
      %c0_9 = arith.constant 0 : index
      %c0_10 = arith.constant 0 : index
      %21 = vector.load %arg9[%c0_9, %c0_10] : memref<1x128xf32, #tpu.memory_space<vmem>>, vector<1x128xf32>
      %cst_11 = arith.constant dense<0.000000e+00> : vector<128xf32>
      %22 = vector.multi_reduction <add>, %20, %cst_11 [0] : vector<8x128xf32> to vector<128xf32>
      %23 = vector.shape_cast %22 : vector<128xf32> to vector<1x128xf32>
      %24 = arith.addf %21, %23 : vector<1x128xf32>
      %c0_12 = arith.constant 0 : index
      %c0_13 = arith.constant 0 : index
      %25 = vector.load %arg9[%c0_12, %c0_13] : memref<1x128xf32, #tpu.memory_space<vmem>>, vector<1x128xf32>
      tpu.vector_store %arg9[%c0_12, %c0_13], %24 {strides = array<i32>} : memref<1x128xf32, #tpu.memory_space<vmem>>, vector<1x128xf32>,
      %c0_14 = arith.constant 0 : index
      %c0_15 = arith.constant 0 : index
      %26 = vector.load %arg10[%c0_14, %c0_15] : memref<1x128xf32, #tpu.memory_space<vmem>>, vector<1x128xf32>
      %27 = arith.mulf %20, %20 : vector<8x128xf32>
      %cst_16 = arith.constant dense<0.000000e+00> : vector<128xf32>
      %28 = vector.multi_reduction <add>, %27, %cst_16 [0] : vector<8x128xf32> to vector<128xf32>
      %29 = vector.shape_cast %28 : vector<128xf32> to vector<1x128xf32>
      %30 = arith.addf %26, %29 : vector<1x128xf32>
      %c0_17 = arith.constant 0 : index
      %c0_18 = arith.constant 0 : index
      %31 = vector.load %arg10[%c0_17, %c0_18] : memref<1x128xf32, #tpu.memory_space<vmem>>, vector<1x128xf32>
      tpu.vector_store %arg10[%c0_17, %c0_18], %30 {strides = array<i32>} : memref<1x128xf32, #tpu.memory_space<vmem>>, vector<1x128xf32>,
    } else {
    }
    %c1_i32 = arith.constant 1 : i32
    %3 = arith.cmpi eq, %arg0, %c1_i32 : i32
    %4 = arith.extui %3 : i1 to i32
    %c0_i32_1 = arith.constant 0 : i32
    %5 = arith.cmpi ne, %4, %c0_i32_1 : i32
    scf.if %5 {
      %c0_i32_2 = arith.constant 0 : i32
      %6 = arith.cmpi eq, %arg1, %c0_i32_2 : i32
      %7 = arith.extui %6 : i1 to i32
      %c0_i32_3 = arith.constant 0 : i32
      %8 = arith.cmpi ne, %7, %c0_i32_3 : i32
      scf.if %8 {
        %c0_21 = arith.constant 0 : index
        %c0_22 = arith.constant 0 : index
        %34 = vector.load %arg9[%c0_21, %c0_22] : memref<1x128xf32, #tpu.memory_space<vmem>>, vector<1x128xf32>
        %cst_23 = arith.constant 1.250000e-01 : f32
        %35 = vector.broadcast %cst_23 : f32 to vector<1x128xf32>
        %36 = arith.mulf %34, %35 : vector<1x128xf32>
        %c0_24 = arith.constant 0 : index
        %c0_25 = arith.constant 0 : index
        %37 = vector.load %arg10[%c0_24, %c0_25] : memref<1x128xf32, #tpu.memory_space<vmem>>, vector<1x128xf32>
        %cst_26 = arith.constant 1.250000e-01 : f32
        %38 = vector.broadcast %cst_26 : f32 to vector<1x128xf32>
        %39 = arith.mulf %37, %38 : vector<1x128xf32>
        %40 = arith.mulf %36, %36 : vector<1x128xf32>
        %41 = arith.subf %39, %40 : vector<1x128xf32>
        %cst_27 = arith.constant 0.000000e+00 : f32
        %42 = vector.broadcast %cst_27 : f32 to vector<1x128xf32>
        %43 = arith.maximumf %41, %42 : vector<1x128xf32>
        %c0_28 = arith.constant 0 : index
        %c0_29 = arith.constant 0 : index
        %44 = vector.load %arg4[%c0_28, %c0_29] : memref<1x128xf32, #tpu.memory_space<vmem>>, vector<1x128xf32>
        %cst_30 = arith.constant 9.99999974E-6 : f32
        %45 = vector.broadcast %cst_30 : f32 to vector<1x128xf32>
        %46 = arith.addf %43, %45 : vector<1x128xf32>
        %47 = math.rsqrt %46 : vector<1x128xf32>
        %48 = arith.mulf %44, %47 : vector<1x128xf32>
        %c0_31 = arith.constant 0 : index
        %c0_32 = arith.constant 0 : index
        %49 = vector.load %arg11[%c0_31, %c0_32] : memref<1x128xf32, #tpu.memory_space<vmem>>, vector<1x128xf32>
        tpu.vector_store %arg11[%c0_31, %c0_32], %48 {strides = array<i32>} : memref<1x128xf32, #tpu.memory_space<vmem>>, vector<1x128xf32>,
        %c0_33 = arith.constant 0 : index
        %c0_34 = arith.constant 0 : index
        %50 = vector.load %arg5[%c0_33, %c0_34] : memref<1x128xf32, #tpu.memory_space<vmem>>, vector<1x128xf32>
        %51 = arith.mulf %36, %48 : vector<1x128xf32>
        %52 = arith.subf %50, %51 : vector<1x128xf32>
        %c0_35 = arith.constant 0 : index
        %c0_36 = arith.constant 0 : index
        %53 = vector.load %arg12[%c0_35, %c0_36] : memref<1x128xf32, #tpu.memory_space<vmem>>, vector<1x128xf32>
        tpu.vector_store %arg12[%c0_35, %c0_36], %52 {strides = array<i32>} : memref<1x128xf32, #tpu.memory_space<vmem>>, vector<1x128xf32>,
      } else {
      }
      %c0 = arith.constant 0 : index
      %c0_4 = arith.constant 0 : index
      %9 = vector.load %arg2[%c0, %c0_4] : memref<8x32xf32, #tpu.memory_space<vmem>>, vector<8x32xf32>
      %c0_5 = arith.constant 0 : index
      %c0_6 = arith.constant 0 : index
      %10 = vector.load %arg3[%c0_5, %c0_6] : memref<32x128xf32, #tpu.memory_space<vmem>>, vector<32x128xf32>
      %cst = arith.constant dense<0.000000e+00> : vector<8x128xf32>
      %11 = tpu.matmul %9, %10, %cst {dimension_numbers = #tpu.dot_dimension_numbers<[1], [0], [0], [1], [0, 0, 1, 1], [], []>} : vector<8x32xf32>, vector<32x128xf32>, vector<8x128xf32> -> vector<8x128xf32>
      %c0_7 = arith.constant 0 : index
      %c0_8 = arith.constant 0 : index
      %12 = vector.load %arg11[%c0_7, %c0_8] : memref<1x128xf32, #tpu.memory_space<vmem>>, vector<1x128xf32>
      %13 = vector.broadcast %12 : vector<1x128xf32> to vector<8x128xf32>
      %14 = arith.mulf %11, %13 : vector<8x128xf32>
      %c0_9 = arith.constant 0 : index
      %c0_10 = arith.constant 0 : index
      %15 = vector.load %arg12[%c0_9, %c0_10] : memref<1x128xf32, #tpu.memory_space<vmem>>, vector<1x128xf32>
      %16 = vector.broadcast %15 : vector<1x128xf32> to vector<8x128xf32>
      %17 = arith.addf %14, %16 : vector<8x128xf32>
      %cst_11 = arith.constant 0.000000e+00 : f32
      %18 = vector.broadcast %cst_11 : f32 to vector<8x128xf32>
      %19 = arith.maximumf %17, %18 : vector<8x128xf32>
      %c0_12 = arith.constant 0 : index
      %c0_13 = arith.constant 0 : index
      %20 = vector.load %arg6[%c0_12, %c0_13] : memref<128x128xf32, #tpu.memory_space<vmem>>, vector<128x128xf32>
      %cst_14 = arith.constant dense<0.000000e+00> : vector<8x128xf32>
      %21 = tpu.matmul %19, %20, %cst_14 {dimension_numbers = #tpu.dot_dimension_numbers<[1], [0], [0], [1], [0, 0, 1, 1], [], []>} : vector<8x128xf32>, vector<128x128xf32>, vector<8x128xf32> -> vector<8x128xf32>
      %c0_15 = arith.constant 0 : index
      %c0_16 = arith.constant 0 : index
      %22 = vector.load %arg7[%c0_15, %c0_16] : memref<1x128xf32, #tpu.memory_space<vmem>>, vector<1x128xf32>
      %23 = vector.broadcast %22 : vector<1x128xf32> to vector<8x128xf32>
      %24 = arith.addf %21, %23 : vector<8x128xf32>
      %25 = vector.extract_strided_slice %24 {offsets = [0, 0], sizes = [8, 4], strides = [1, 1]} : vector<8x128xf32> to vector<8x4xf32>
      %26 = arith.negf %25 : vector<8x4xf32>
      %27 = math.exp %26 : vector<8x4xf32>
      %cst_17 = arith.constant 1.000000e+00 : f32
      %28 = vector.broadcast %cst_17 : f32 to vector<8x4xf32>
      %29 = arith.addf %28, %27 : vector<8x4xf32>
      %30 = arith.divf %28, %29 : vector<8x4xf32>
      %cst_18 = arith.constant 3.000000e+00 : f32
      %31 = vector.broadcast %cst_18 : f32 to vector<8x4xf32>
      %32 = arith.mulf %31, %30 : vector<8x4xf32>
      %c0_19 = arith.constant 0 : index
      %c0_20 = arith.constant 0 : index
      %33 = vector.load %arg8[%c0_19, %c0_20] : memref<8x4xf32, #tpu.memory_space<vmem>>, vector<8x4xf32>
      tpu.vector_store %arg8[%c0_19, %c0_20], %32 {strides = array<i32>} : memref<8x4xf32, #tpu.memory_space<vmem>>, vector<8x4xf32>,
    } else {
    }
    return
  }
  func.func @transform_0(%arg0: i32, %arg1: i32) -> (i32, i32) {
    %c0_i32 = arith.constant 0 : i32
    %c0_i32_0 = arith.constant 0 : i32
    return %arg1, %c0_i32 : i32, i32
  }
  func.func @transform_1(%arg0: i32, %arg1: i32) -> (i32, i32) {
    %c0_i32 = arith.constant 0 : i32
    %c0_i32_0 = arith.constant 0 : i32
    %c0_i32_1 = arith.constant 0 : i32
    return %c0_i32, %c0_i32_0 : i32, i32
  }
  func.func @transform_2(%arg0: i32, %arg1: i32) -> (i32, i32) {
    %c0_i32 = arith.constant 0 : i32
    %c0_i32_0 = arith.constant 0 : i32
    %c0_i32_1 = arith.constant 0 : i32
    return %c0_i32, %c0_i32_0 : i32, i32
  }
  func.func @transform_3(%arg0: i32, %arg1: i32) -> (i32, i32) {
    %c0_i32 = arith.constant 0 : i32
    %c0_i32_0 = arith.constant 0 : i32
    %c0_i32_1 = arith.constant 0 : i32
    return %c0_i32, %c0_i32_0 : i32, i32
  }
  func.func @transform_4(%arg0: i32, %arg1: i32) -> (i32, i32) {
    %c0_i32 = arith.constant 0 : i32
    %c0_i32_0 = arith.constant 0 : i32
    %c0_i32_1 = arith.constant 0 : i32
    return %c0_i32, %c0_i32_0 : i32, i32
  }
  func.func @transform_5(%arg0: i32, %arg1: i32) -> (i32, i32) {
    %c0_i32 = arith.constant 0 : i32
    %c0_i32_0 = arith.constant 0 : i32
    %c0_i32_1 = arith.constant 0 : i32
    return %c0_i32, %c0_i32_0 : i32, i32
  }
  func.func @transform_6(%arg0: i32, %arg1: i32) -> (i32, i32) {
    %0 = arith.muli %arg0, %arg1 : i32
    %c0_i32 = arith.constant 0 : i32
    %c0_i32_0 = arith.constant 0 : i32
    return %0, %c0_i32 : i32, i32
  }
}

</mosaic_0001>

<bundles_post_ra>
// kernel: tpu_custom_call.1
= control target key start
LH: loop header
LB: loop body
LE: loop exit
PB: predicated region body
PF: predicated region fallthrough
CT: control target
= control target key end

     0   :  { %11 = vsyncpa [#allocation7], 0  ;;  %s924_s0 = inlined_call_operand.hbm [shape: f32[8,32], index: 0, kind: input, shape index: {}]   ;;  %s925_s1 = inlined_call_operand.hbm [shape: f32[32,128], index: 1, kind: input, shape index: {}]   ;;  %s926_s2 = inlined_call_operand.vmem [shape: f32[1,128], index: 2, kind: input, shape index: {}]   ;;  %s927_s3 = inlined_call_operand.vmem [shape: f32[1,128], index: 3, kind: input, shape index: {}]   ;;  %s928_s4 = inlined_call_operand.hbm [shape: f32[128,128], index: 4, kind: input, shape index: {}]   ;;  %s929_s5 = inlined_call_operand.vmem [shape: f32[1,128], index: 5, kind: input, shape index: {}]   ;;  %s930_s6 = inlined_call_operand.vmem [shape: f32[8,4], index: 6, kind: output, shape index: {}]  }
   0x1   :  { %12 = vsyncpa [#allocation9], 0  ;;  %s839_s21 = smov 0   ;;  %s841_s22 = smov 0  }
   0x2   :  { %s843_s23 = smov 0  }
   0x3 LB: > { %s219_s26 = sshll.u32 %s925_s1, 4  ;;  %s590_s27 = sadd.s32 4294967295, %s796_s23   ;;  %s796_s23 = sphi %s843_s23, %s18_s23   ;;  %s792_s22 = sphi %s841_s22, %s935_s22   ;;  %s788_s21 = sphi %s839_s21, %s934_s21   ;;  %s220_s26 = int_to_ptr.hbm [resolvable:$true] %s219_s26 }
   0x4   : > { %p592_p0 = scmp.ge.s32.totalorder %s796_s23, 1  ;;  %p194_p1 = scmp.lt.s32.totalorder %s796_s23, 3 }
   0x5   : > { %p860_p2 = scmp.eq.s32.totalorder %s590_s27, 0  ;;  %s798_s30 = smov [#allocation8]  }
   0x6   : > { %p864_p3 = pnand %p592_p0, %p194_p1  ;;  %s221_s7 = sshll.u32 %s798_s30, 4  ;;  %s222_s7 = int_to_ptr.vmem [resolvable:$true] %s221_s7 }
   0x7   : > { %s30_s9 = sadd.s32 1, %s792_s22  ;;  %s799_s10 = smov 128  }
   0x8   : > { %p621_p4 = pneg %p864_p3  ;;  %p32_p6 = scmp.ge.s32.totalorder %s30_s9, 2 }
   0x9   : > { %s800_s11 = smov 8   ;;  %s208_s14 = sshll.u32 %s924_s0, 4  ;;  %s209_s14 = int_to_ptr.hbm [resolvable:$true] %s208_s14 }
   0xa   : > { %p872_p5 = pnand %p860_p2, %p621_p4  ;;  %s937_s9 = smov (%p32_p6, %s30_s9), 0 }
   0xb   : > { %s801_s15 = smov [#allocation6]   ;;  %s239_s19 = sshll.u32 %s928_s4, 4  ;;  %s240_s19 = int_to_ptr.hbm [resolvable:$true] %s239_s19 }
   0xc   : > { %627 = dma.hbm_to_vmem [thread:$0]  (!%p872_p5), %s220_s26, 512, %s222_s7, [#allocation9], %s799_s10, %s799_s10, %s800_s11  }
   0xd   : > { %s210_s16 = sshll.u32 %s801_s15, 4  ;;  %s802_s20 = smov [#allocation10]   ;;  %s211_s16 = int_to_ptr.vmem [resolvable:$true] %s210_s16 }
   0xe   : > { %624 = dma.hbm_to_vmem [thread:$0]  (!%p872_p5), %s209_s14, 128, %s211_s16, [#allocation7]  }
   0xf   : > { %s241_s24 = sshll.u32 %s802_s20, 4  ;;  %260 = sbr.rel (%p864_p3) target bundleno = 487 (0x1e7), region = 44  ;;  %s242_s24 = int_to_ptr.vmem [resolvable:$true] %s241_s24 }
  0x10   : > { %630 = dma.hbm_to_vmem [thread:$0]  (!%p872_p5), %s240_s19, 2048, %s242_s24, [#allocation9], %s799_s10, %s799_s10, %s800_s11  }
  0x14   : > { %779 = dma.done.wait (%p860_p2), [#allocation7], 128  }
  0x15   : > { %781 = vsyncadd (%p860_p2), [#allocation7], 4294967168 }
  0x16   : > { %783 = dma.done.wait (%p860_p2), [#allocation9], 2560  }
  0x17   : > { %785 = vsyncadd (%p860_p2), [#allocation9], 4294964736  ;;  %p600_p7 = scmp.ne.s32.totalorder %s788_s21, 0 }
  0x19   : > { %305 = sbr.rel (%p600_p7) target bundleno = 181 (0xb5), region = 60 }
  0x1e   : > { %v316_v0 = vld [vmem:[#allocation8 + $0x18] sm:$0xff]  ;;  %v315_v1 = vld [vmem:[#allocation8 + $0x10] sm:$0xff]  ;;  %v803_v2 = vmov 0.0   ;;  %v314_v3 = vld [vmem:[#allocation8 + $0x8] sm:$0xff]  ;;  %vm317_vm0 = vcmask 261120  }
  0x1f   : > { %333 = vmatpush.msra.mxu0 %v316_v0  ;;  %310 = vst [vmem:[#allocation2] sm:$0x1] %v803_v2  ;;  %v313_v4 = vld [vmem:[#allocation8] sm:$0xff]  ;;  %v312_v5 = vld [vmem:[#allocation6] sm:$0xff] }
  0x20   : > { %311 = vst [vmem:[#allocation3] sm:$0x1] %v803_v2 }
  0x21   : > { %334 = vmatpush.msra.mxu0 %v315_v1 }
  0x23   : > { %335 = vmatpush.msra.mxu0 %v314_v3 }
  0x25   : > { %336 = vmatpush.msra.mxu0 %v313_v4 }
  0x26   : > { %601 = vmatmul.msk.f32.vlgmr.msra.gmra.mxu0 %vm317_vm0, %v312_v5  ;;  %v350_v17 = vld [vmem:[#allocation2] sm:$0x1] }
  0x27   : > { %v359_v20 = vld [vmem:[#allocation3] sm:$0x1] }
  0xa3   : > { %v338_v6 = vpop.f32.mrf.mxu0 }
  0xa4   : > { %v351_v7 = vrot.slane %v338_v6, 4  ;;  %v360_v8 = vmul.f32 %v338_v6, %v338_v6 }
  0xa6   : > { %v352_v9 = vadd.f32 %v351_v7, %v338_v6  ;;  %v361_v10 = vrot.slane %v360_v8, 4 }
  0xa8   : > { %v353_v11 = vrot.slane %v352_v9, 2  ;;  %v362_v12 = vadd.f32 %v361_v10, %v360_v8 }
  0xaa   : > { %v354_v13 = vadd.f32 %v353_v11, %v352_v9  ;;  %v363_v14 = vrot.slane %v362_v12, 2 }
  0xac   : > { %v355_v15 = vrot.slane %v354_v13, 1  ;;  %v364_v16 = vadd.f32 %v363_v14, %v362_v12 }
  0xae   : > { %v356_v18 = vadd.f32 %v355_v15, %v354_v13  ;;  %v365_v19 = vrot.slane %v364_v16, 1 }
  0xb0   : > { %v357_v21 = vadd.f32 %v356_v18, %v350_v17  ;;  %v366_v22 = vadd.f32 %v365_v19, %v364_v16 }
  0xb2   : > { %358 = vst [vmem:[#allocation2] sm:$0x1] %v357_v21  ;;  %v367_v23 = vadd.f32 %v366_v22, %v359_v20 }
  0xb4   : > { %368 = vst [vmem:[#allocation3] sm:$0x1] %v367_v23 }
  0xb5 PF: > { %p602_p8 = scmp.ne.s32.totalorder %s788_s21, 1 }
  0xb7   : > { %372 = sbr.rel (%p602_p8) target bundleno = 487 (0x1e7), region = 68 }
  0xbc   : > { %v406_v24 = vld [vmem:[#allocation8 + $0x18] sm:$0xff]  ;;  %v405_v25 = vld [vmem:[#allocation8 + $0x10] sm:$0xff]  ;;  %v404_v27 = vld [vmem:[#allocation8 + $0x8] sm:$0xff]  ;;  %vm407_vm1 = vcmask 261120   ;;  %vm502_vm9 = vcmask 31744  }
  0xbd   : > { %423 = vmatpush.msra.mxu0 %v406_v24  ;;  %v457_v26 = vld [vmem:[#allocation10 + $0x78] sm:$0xff]  ;;  %v456_v28 = vld [vmem:[#allocation10 + $0x70] sm:$0xff]  ;;  %v455_v29 = vld [vmem:[#allocation10 + $0x68] sm:$0xff] }
  0xbe   : > { %462 = vmatpush.msra.mxu1 %v457_v26  ;;  %v403_v30 = vld [vmem:[#allocation8] sm:$0xff]  ;;  %v402_v31 = vld [vmem:[#allocation6] sm:$0xff]  ;;  %v377_v33 = vld [vmem:[#allocation2] sm:$0x1] }
  0xbf   : > { %424 = vmatpush.msra.mxu0 %v405_v25  ;;  %v454_v32 = vld [vmem:[#allocation10 + $0x60] sm:$0xff]  ;;  %v378_v34 = vmul.f32 0.125, %v377_v33  ;;  %v379_v35 = vld [vmem:[#allocation3] sm:$0x1]  ;;  %v453_v36 = vld [vmem:[#allocation10 + $0x58] sm:$0xff] }
  0xc0   : > { %463 = vmatpush.msra.mxu1 %v456_v28  ;;  %v380_v37 = vmul.f32 0.125, %v379_v35  ;;  %v452_v39 = vld [vmem:[#allocation10 + $0x50] sm:$0xff]  ;;  %v451_v41 = vld [vmem:[#allocation10 + $0x48] sm:$0xff]  ;;  %v450_v43 = vld [vmem:[#allocation10 + $0x40] sm:$0xff] }
  0xc1   : > { %425 = vmatpush.msra.mxu0 %v404_v27  ;;  %v381_v38 = vmul.f32 %v378_v34, %v378_v34  ;;  %v449_v45 = vld [vmem:[#allocation10 + $0x38] sm:$0xff]  ;;  %v448_v46 = vld [vmem:[#allocation10 + $0x30] sm:$0xff]  ;;  %v447_v47 = vld [vmem:[#allocation10 + $0x28] sm:$0xff] }
  0xc2   : > { %464 = vmatpush.msra.mxu1 %v455_v29  ;;  %v446_v48 = vld [vmem:[#allocation10 + $0x20] sm:$0xff]  ;;  %v384_v54 = vld [vmem:[%s926_s2] sm:$0x1]  ;;  %v445_v61 = vld [vmem:[#allocation10 + $0x18] sm:$0xff] }
  0xc3   : > { %426 = vmatpush.msra.mxu0 %v403_v30  ;;  %v382_v40 = vsub.f32 %v380_v37, %v381_v38  ;;  %v398_v59 = vld [vmem:[%s927_s3] sm:$0x1]  ;;  %v443_v63 = vld [vmem:[#allocation10 + $0x8] sm:$0xff]  ;;  %v442_v0 = vld [vmem:[#allocation10] sm:$0xff] }
  0xc4   : > { %603 = vmatmul.msk.f32.vlgmr.msra.gmra.mxu0 %vm407_vm1, %v402_v31  ;;  %465 = vmatpush.msra.mxu1 %v454_v32  ;;  %v444_v62 = vld [vmem:[#allocation10 + $0x10] sm:$0xff] }
  0xc5   : > { %v383_v42 = vmax.f32 %v382_v40, 0.0  ;;  %v669_v7 = vld [vmem:[%s929_s5] ss:$0 sm:$0xff] }
  0xc6   : > { %466 = vmatpush.msra.mxu1 %v453_v36 }
  0xc7   : > { %v385_v44 = vadd.f32 1e-05, %v383_v42 }
  0xc8   : > { %467 = vmatpush.msra.mxu1 %v452_v39 }
  0xc9   : > { %670 = vrsqrt.f32 %v385_v44  ;;  %vm392_vm2 = vweird.f32 %v385_v44 }
  0xca   : > { %468 = vmatpush.msra.mxu1 %v451_v41 }
  0xcc   : > { %469 = vmatpush.msra.mxu1 %v450_v43 }
  0xce   : > { %470 = vmatpush.msra.mxu1 %v449_v45 }
  0xcf   : > { %v671_v49 = vpop.eup %670 }
  0xd0   : > { %471 = vmatpush.msra.mxu1 %v448_v46  ;;  %v387_v50 = vmul.f32 %v671_v49, %v385_v44  ;;  %vm393_vm3 = vweird.f32 %v671_v49 }
  0xd1   : > { %vm394_vm4 = vmor %vm392_vm2, %vm393_vm3 }
  0xd2   : > { %472 = vmatpush.msra.mxu1 %v447_v47  ;;  %v388_v51 = vmul.f32 %v671_v49, %v387_v50 }
  0xd4   : > { %473 = vmatpush.msra.mxu1 %v446_v48  ;;  %v389_v52 = vmul.f32 0.5, %v388_v51 }
  0xd6   : > { %v390_v53 = vsub.f32 1.5, %v389_v52  ;;  %474 = vmatpush.msra.mxu1 %v445_v61 }
  0xd8   : > { %v391_v55 = vmul.f32 %v671_v49, %v390_v53  ;;  %475 = vmatpush.msra.mxu1 %v444_v62 }
  0xda   : > { %v395_v56 = vsel %vm394_vm4, %v671_v49, %v391_v55  ;;  %476 = vmatpush.msra.mxu1 %v443_v63 }
  0xdb   : > { %v396_v57 = vmul.f32 %v395_v56, %v384_v54 }
  0xdc   : > { %477 = vmatpush.msra.mxu1 %v442_v0 }
  0xdd   : > { %397 = vst [vmem:[#allocation4] sm:$0x1] %v396_v57  ;;  %v399_v58 = vmul.f32 %v396_v57, %v378_v34 }
  0xdf   : > { %v400_v60 = vsub.f32 %v398_v59, %v399_v58 }
  0xe1   : > { %401 = vst [vmem:[#allocation5] sm:$0x1] %v400_v60 }
  0xe4   : > { %v667_v1 = vld [vmem:[#allocation4] ss:$0 sm:$0xff] }
  0xe8   : > { %v668_v2 = vld [vmem:[#allocation5] ss:$0 sm:$0xff] }
 0x141   : > { %v428_v3 = vpop.f32.mrf.mxu0 }
 0x142   : > { %v435_v4 = vmul.f32 %v667_v1, %v428_v3 }
 0x144   : > { %v440_v5 = vadd.f32 %v668_v2, %v435_v4 }
 0x146   : > { %v441_v6 = vmax.f32 %v440_v5, 0.0 }
 0x148   : > { %478 = vmatmul.f32.vlgmr.msra.gmra.mxu1 %v441_v6 }
 0x1c5   : > { %v479_v8 = vpop.f32.mrf.mxu1 }
 0x1c6   : > { %v480_v9 = vadd.f32 %v669_v7, %v479_v8 }
 0x1c8   : > { %v604_v10 = vmul.f32 -1.442695, %v480_v9 }
 0x1ca   : > { %672 = vpow2.f32 %v604_v10 }
 0x1d0   : > { %v673_v11 = vpop.eup %672 }
 0x1d1   : > { %v485_v12 = vadd.f32 1.0, %v673_v11 }
 0x1d3   : > { %674 = vrcp.f32 %v485_v12  ;;  %v497_v16 = vand.u32 2147483648, %v485_v12  ;;  %v495_v18 = vand.u32 2147483647, %v485_v12  ;;  %vm491_vm6 = vweird.f32 %v485_v12 }
 0x1d5   : > { %v498_v20 = vor.u32 1.1754944e-38, %v497_v16  ;;  %vm496_vm8 = vcmp.eq.f32.partialorder %v495_v18, 8.507059e+37 }
 0x1d9   : > { %v675_v13 = vpop.eup %674 }
 0x1da   : > { %v487_v14 = vmul.f32 %v675_v13, %v485_v12  ;;  %vm492_vm5 = vweird.f32 %v675_v13 }
 0x1db   : > { %vm493_vm7 = vmor %vm491_vm6, %vm492_vm5 }
 0x1dc   : > { %v488_v15 = vsub.f32 1.0, %v487_v14 }
 0x1de   : > { %v489_v17 = vmul.f32 %v675_v13, %v488_v15 }
 0x1e0   : > { %v490_v19 = vadd.f32 %v675_v13, %v489_v17 }
 0x1e2   : > { %v494_v21 = vsel %vm493_vm7, %v675_v13, %v490_v19 }
 0x1e3   : > { %v499_v22 = vsel %vm496_vm8, %v498_v20, %v494_v21 }
 0x1e4   : > { %v501_v23 = vmul.f32 3.0, %v499_v22 }
 0x1e6   : > { %503 = vst.msk [vmem:[%s930_s6] sm:$0xff] %vm502_vm9, %v501_v23 }
 0x1e7 PF: > { %s18_s23 = sadd.s32 1, %s796_s23   ;;  %s934_s21 = smov %s792_s22 }
 0x1e8   : > { %p15_p9 = scmp.ge.s32.totalorder %s18_s23, 4   ;;  %s935_s22 = smov %s937_s9 }
 0x1ea   :  { %17 = sbr.rel (!%p15_p9) target bundleno = 3 (0x3), region = 101 }
 0x1ef   :  { %526 = vsyncpa [#allocation7], 1 }
 0x1f0   :  { %528 = vsyncpa [#allocation7 + $0x1], 1 }
 0x1f1   :  { %529 = vsyncpa [#allocation9], 1 }

</bundles_post_ra>
